<compile_context>
chip_gen: v7x
topology: tpu7x:2x2x1
jax: 0.10.0
libtpu: 0.0.40
codegen_flags: <defaults>
</compile_context>

<pallas_src>
import functools

import jax
import jax.numpy as jnp
from jax.experimental import pallas as pl
from jax.experimental.pallas import tpu as pltpu


def _cdiv(a, b):
    return (a + b - 1) // b


def _round_up(x, m):
    return _cdiv(x, m) * m


# ---------------------------------------------------------------------------
# Kernel
# ---------------------------------------------------------------------------
def _disc_kernel(x_ref, w1_ref, b1_ref, w2_ref, b2_ref, w3_ref, b3_ref, o_ref):
    """Fused MLP tile: Linear -> LeakyReLU(0.2) -> Linear -> LeakyReLU(0.2) -> Linear.

    x_ref : (tm, pacdim) f32 activation tile (rows = packed samples), cast to
            bf16 in-kernel for the MXU.
    w*_ref: bf16 padded weights (single-buffered, VMEM-resident).
    b*_ref: f32 padded bias rows.
    o_ref : (tm, 128) bf16 lane-dense output tile (column 0 = logit).
    """
    x = x_ref[...].astype(jnp.bfloat16)                       # VPU cast, MXU bf16 path
    h = jnp.dot(x, w1_ref[...], preferred_element_type=jnp.float32)
    h = h + b1_ref[...]
    h = jnp.where(h > 0, h, 0.2 * h)       # LeakyReLU(0.2); Dropout = identity (eval)

    h = jnp.dot(h.astype(jnp.bfloat16), w2_ref[...], preferred_element_type=jnp.float32)
    h = h + b2_ref[...]
    h = jnp.where(h > 0, h, 0.2 * h)

    o = jnp.dot(h.astype(jnp.bfloat16), w3_ref[...], preferred_element_type=jnp.float32)
    o_ref[...] = (o + b3_ref[...]).astype(o_ref.dtype)        # f32 bias add, bf16 store


# ---------------------------------------------------------------------------
# Generation-aware tiling / VMEM budgeting
# ---------------------------------------------------------------------------
def _vmem_capacity_bytes():
    try:
        info = pltpu.get_tpu_info()
        cap = int(getattr(info, "vmem_capacity_bytes", 0) or 0)
        if cap > 0:
            return cap
    except Exception:
        pass
    return 64 * 1024 * 1024  # conservative (v7x per-TensorCore)


def _generation_tuning():
    cap = _vmem_capacity_bytes()
    if cap >= 96 * 1024 * 1024:
        # v5e / v6e: 128 MiB VMEM, single TensorCore, lowest HBM BW -> big tiles
        # and deeper activation pipelining.
        return dict(budget=72 << 20, limit_cap=100 << 20, act_bufs=3,
                    min_tiles=1, tm_max=2048)
    # v7x: 64 MiB per-TC VMEM, 2 TensorCores -> leave Mosaic headroom and keep
    # >= 2 grid steps so dimension_semantics=("parallel",) uses both cores.
    return dict(budget=40 << 20, limit_cap=52 << 20, act_bufs=2,
                min_tiles=2, tm_max=1024)


def _working_set_bytes(tm, pacdim, P1, P2, PO, act_bufs):
    # Single-buffered bf16 weights + f32 bias rows.
    w_bytes = 2 * (pacdim * P1 + P1 * P2 + P2 * PO) + 4 * (P1 + P2 + PO)
    in_bytes = act_bufs * tm * pacdim * 4          # f32 activation tile buffers
    out_bytes = 2 * tm * PO * 2                    # bf16 output tiles (double-buffered)
    mid_bytes = tm * (2 * pacdim + 6 * P1 + 6 * P2)  # in-kernel bf16 casts + f32 h tiles
    return w_bytes + in_bytes + out_bytes + mid_bytes


def _choose_tile_m(m, pacdim, P1, P2, PO, tuning):
    """Largest balanced M-tile (multiple of 16) that fits the VMEM budget."""
    tm_fit = 16
    for cand in (2048, 1024, 512, 256, 128, 64, 32, 16):
        if cand <= tuning["tm_max"] and _working_set_bytes(
                cand, pacdim, P1, P2, PO, tuning["act_bufs"]) <= tuning["budget"]:
            tm_fit = cand
            break
    # Balance tiles so edge padding is < one sublane group; keep >= min_tiles
    # grid steps (v7x megacore) when the packed batch is big enough.
    min_tiles = tuning["min_tiles"] if m >= 32 else 1
    n_tiles = max(_cdiv(m, tm_fit), min_tiles)
    tm = min(tm_fit, _round_up(_cdiv(m, n_tiles), 16))
    return max(tm, 16)


def _spec(shape, index_map, bufs=None):
    """BlockSpec with optional explicit buffer depth (falls back if unsupported)."""
    if bufs is not None and bufs != 2:
        try:
            return pl.BlockSpec(shape, index_map, pipeline_mode=pl.Buffered(bufs))
        except TypeError:
            pass
    return pl.BlockSpec(shape, index_map)


# ---------------------------------------------------------------------------
# Params
# ---------------------------------------------------------------------------
def init_params(key, input_dim, discriminator_dim, pac):
    """Deterministic init matching torch.nn.Linear shapes (stored transposed)."""
    dims = [input_dim * pac] + list(discriminator_dim) + [1]
    params = []
    for i in range(len(dims) - 1):
        fan_in, fan_out = dims[i], dims[i + 1]
        key, kw, kb = jax.random.split(key, 3)
        bound = 1.0 / jnp.sqrt(jnp.float32(fan_in))
        w = jax.random.uniform(kw, (fan_in, fan_out), jnp.float32, -bound, bound)
        b = jax.random.uniform(kb, (1, fan_out), jnp.float32, -bound, bound)
        params.append((w, b))
    return params


def prepare_params(params):
    """Pad + bf16-cast the weights ONCE (do this outside the jitted forward)."""
    (w1, b1), (w2, b2), (w3, b3) = params
    pacdim, d1 = w1.shape
    d2 = w2.shape[1]
    P1, P2, PO = _round_up(d1, 128), _round_up(d2, 128), 128

    def pad2(a, rows, cols):
        return jnp.pad(a, ((0, rows - a.shape[0]), (0, cols - a.shape[1])))

    return (
        pad2(w1, pacdim, P1).astype(jnp.bfloat16),
        pad2(b1, 1, P1).astype(jnp.float32),
        pad2(w2, P1, P2).astype(jnp.bfloat16),
        pad2(b2, 1, P2).astype(jnp.float32),
        pad2(w3, P2, PO).astype(jnp.bfloat16),
        pad2(b3, 1, PO).astype(jnp.float32),
    )


# ---------------------------------------------------------------------------
# Wrapper
# ---------------------------------------------------------------------------
def discriminator_forward(input_, padded_params, pac):
    """JAX wrapper reproducing Discriminator.forward (eval-mode Dropout)."""
    B, input_dim = input_.shape
    assert B % pac == 0, "batch must be divisible by pac"
    pacdim = input_dim * pac
    m = B // pac
    x = input_.reshape(m, pacdim)        # == input_.view(-1, self.pacdim); no copy

    w1p, b1p, w2p, b2p, w3p, b3p = padded_params
    assert w1p.shape[0] == pacdim, "padded params do not match pac * input_dim"
    P1, P2, PO = w1p.shape[1], w2p.shape[1], w3p.shape[1]

    tuning = _generation_tuning()
    tm = _choose_tile_m(m, pacdim, P1, P2, PO, tuning)
    grid_m = _cdiv(m, tm)
    # Deeper activation buffering only pays off with enough grid steps.
    act_bufs = tuning["act_bufs"] if grid_m >= tuning["act_bufs"] else None

    flops = 2 * m * (pacdim * P1 + P1 * P2 + P2 * PO)
    bytes_accessed = (
        x.size * 4
        + (w1p.size + w2p.size + w3p.size) * 2
        + (b1p.size + b2p.size + b3p.size) * 4
        + m * PO * 2
    )
    vmem_limit = int(min(
        max(2 * _working_set_bytes(tm, pacdim, P1, P2, PO, tuning["act_bufs"]),
            16 << 20),
        tuning["limit_cap"]))

    out = pl.pallas_call(
        _disc_kernel,
        out_shape=jax.ShapeDtypeStruct((m, PO), jnp.bfloat16),
        grid=(grid_m,),
        in_specs=[
            _spec((tm, pacdim), lambda i: (i, 0), bufs=act_bufs),   # streamed f32 tile
            _spec((pacdim, P1), lambda i: (0, 0), bufs=1),          # layer 1 (resident)
            _spec((1, P1), lambda i: (0, 0), bufs=1),
            _spec((P1, P2), lambda i: (0, 0), bufs=1),              # layer 2
            _spec((1, P2), lambda i: (0, 0), bufs=1),
            _spec((P2, PO), lambda i: (0, 0), bufs=1),              # output layer
            _spec((1, PO), lambda i: (0, 0), bufs=1),
        ],
        out_specs=pl.BlockSpec((tm, PO), lambda i: (i, 0)),
        compiler_params=pltpu.CompilerParams(
            dimension_semantics=("parallel",),
            vmem_limit_bytes=vmem_limit,
        ),
        cost_estimate=pl.CostEstimate(
            flops=flops, transcendentals=0, bytes_accessed=bytes_accessed),
    )(x, w1p, b1p, w2p, b2p, w3p, b3p)

    return out[:, :1].astype(jnp.float32)


# ---------------------------------------------------------------------------
# Reference
# ---------------------------------------------------------------------------
def reference_forward(input_, params, pac, matmul_dtype=jnp.float32):
    """Plain-JAX reference (eval-mode Dropout)."""
    B, input_dim = input_.shape
    x = input_.reshape(B // pac, input_dim * pac)
    (w1, b1), (w2, b2), (w3, b3) = params

    def mm(a, w):
        return jnp.dot(a.astype(matmul_dtype), w.astype(matmul_dtype),
                       preferred_element_type=jnp.float32)

    h = mm(x, w1) + b1
    h = jnp.where(h > 0, h, 0.2 * h)
    h = mm(h, w2) + b2
    h = jnp.where(h > 0, h, 0.2 * h)
    return mm(h, w3) + b3


# ---------------------------------------------------------------------------
# Demo / correctness check
# ---------------------------------------------------------------------------
if __name__ == "__main__":
    pac = 10
    input_dim = 16
    discriminator_dim = (32, 32)

    key = jax.random.PRNGKey(0)
    key, kp = jax.random.split(key)
    params = init_params(kp, input_dim, discriminator_dim, pac)
    padded = prepare_params(params)      # padded/cast once, reused across calls

    fwd = jax.jit(functools.partial(discriminator_forward, pac=pac))

    for batch in (20, 650):              # tiny packed batch + multi-tile / edge case
        key, kx = jax.random.split(key)
        x = jax.random.normal(kx, (batch, input_dim), jnp.float32)

        out = jax.block_until_ready(fwd(x, padded))
        assert out.shape == (batch // pac, 1)

        # Tight-ish check vs a bf16-matmul reference (kernel stores bf16 logits).
        ref_bf16 = reference_forward(x, params, pac, matmul_dtype=jnp.bfloat16)
        assert jnp.allclose(out, ref_bf16, atol=1e-2, rtol=1e-2), \
            f"mismatch vs bf16 reference (batch={batch})"

        # Looser sanity check vs the full-f32 reference.
        ref_f32 = reference_forward(x, params, pac)
        assert jnp.allclose(out, ref_f32, atol=5e-2, rtol=5e-2), \
            f"mismatch vs f32 reference (batch={batch})"

    print("KERNEL_OK")
</pallas_src>

<mosaic_0001>
module attributes {stable_mosaic.version = 11 : i64} {
  func.func @_disc_kernel(%arg0: i32, %arg1: memref<16x160xf32, #tpu.memory_space<vmem>>, %arg2: memref<160x128xbf16, #tpu.memory_space<vmem>>, %arg3: memref<1x128xf32, #tpu.memory_space<vmem>>, %arg4: memref<128x128xbf16, #tpu.memory_space<vmem>>, %arg5: memref<1x128xf32, #tpu.memory_space<vmem>>, %arg6: memref<128x128xbf16, #tpu.memory_space<vmem>>, %arg7: memref<1x128xf32, #tpu.memory_space<vmem>>, %arg8: memref<16x128xbf16, #tpu.memory_space<vmem>>) attributes {dimension_semantics = [#tpu.dimension_semantics<parallel>], iteration_bounds = array<i64: 1>, scalar_prefetch = 0 : i64, scratch_operands = 0 : i64, tpu.core_type = #tpu.core_type<tc>, window_params = [{transform_indices = @transform_0, window_bounds = array<i64: 16, 160>}, {pipeline_mode = #tpu.pipeline_mode<synchronous>, transform_indices = @transform_1, window_bounds = array<i64: 160, 128>}, {pipeline_mode = #tpu.pipeline_mode<synchronous>, transform_indices = @transform_2, window_bounds = array<i64: 1, 128>}, {pipeline_mode = #tpu.pipeline_mode<synchronous>, transform_indices = @transform_3, window_bounds = array<i64: 128, 128>}, {pipeline_mode = #tpu.pipeline_mode<synchronous>, transform_indices = @transform_4, window_bounds = array<i64: 1, 128>}, {pipeline_mode = #tpu.pipeline_mode<synchronous>, transform_indices = @transform_5, window_bounds = array<i64: 128, 128>}, {pipeline_mode = #tpu.pipeline_mode<synchronous>, transform_indices = @transform_6, window_bounds = array<i64: 1, 128>}, {transform_indices = @transform_7, window_bounds = array<i64: 16, 128>}]} {
    %c0 = arith.constant 0 : index
    %c0_0 = arith.constant 0 : index
    %0 = vector.load %arg1[%c0, %c0_0] : memref<16x160xf32, #tpu.memory_space<vmem>>, vector<16x160xf32>
    %1 = arith.truncf %0 : vector<16x160xf32> to vector<16x160xbf16>
    %c0_1 = arith.constant 0 : index
    %c0_2 = arith.constant 0 : index
    %2 = vector.load %arg2[%c0_1, %c0_2] : memref<160x128xbf16, #tpu.memory_space<vmem>>, vector<160x128xbf16>
    %cst = arith.constant dense<0.000000e+00> : vector<16x128xf32>
    %3 = tpu.matmul %1, %2, %cst {dimension_numbers = #tpu.dot_dimension_numbers<[1], [0], [0], [1], [0, 0, 1, 1], [], []>} : vector<16x160xbf16>, vector<160x128xbf16>, vector<16x128xf32> -> vector<16x128xf32>
    %c0_3 = arith.constant 0 : index
    %c0_4 = arith.constant 0 : index
    %4 = vector.load %arg3[%c0_3, %c0_4] : memref<1x128xf32, #tpu.memory_space<vmem>>, vector<1x128xf32>
    %5 = vector.broadcast %4 : vector<1x128xf32> to vector<16x128xf32>
    %6 = arith.addf %3, %5 : vector<16x128xf32>
    %cst_5 = arith.constant 0.000000e+00 : f32
    %7 = vector.broadcast %cst_5 : f32 to vector<16x128xf32>
    %8 = arith.cmpf ogt, %6, %7 : vector<16x128xf32>
    %cst_6 = arith.constant 2.000000e-01 : f32
    %9 = vector.broadcast %cst_6 : f32 to vector<16x128xf32>
    %10 = arith.mulf %9, %6 : vector<16x128xf32>
    %11 = arith.select %8, %6, %10 : vector<16x128xi1>, vector<16x128xf32>
    %12 = arith.truncf %11 : vector<16x128xf32> to vector<16x128xbf16>
    %c0_7 = arith.constant 0 : index
    %c0_8 = arith.constant 0 : index
    %13 = vector.load %arg4[%c0_7, %c0_8] : memref<128x128xbf16, #tpu.memory_space<vmem>>, vector<128x128xbf16>
    %cst_9 = arith.constant dense<0.000000e+00> : vector<16x128xf32>
    %14 = tpu.matmul %12, %13, %cst_9 {dimension_numbers = #tpu.dot_dimension_numbers<[1], [0], [0], [1], [0, 0, 1, 1], [], []>} : vector<16x128xbf16>, vector<128x128xbf16>, vector<16x128xf32> -> vector<16x128xf32>
    %c0_10 = arith.constant 0 : index
    %c0_11 = arith.constant 0 : index
    %15 = vector.load %arg5[%c0_10, %c0_11] : memref<1x128xf32, #tpu.memory_space<vmem>>, vector<1x128xf32>
    %16 = vector.broadcast %15 : vector<1x128xf32> to vector<16x128xf32>
    %17 = arith.addf %14, %16 : vector<16x128xf32>
    %cst_12 = arith.constant 0.000000e+00 : f32
    %18 = vector.broadcast %cst_12 : f32 to vector<16x128xf32>
    %19 = arith.cmpf ogt, %17, %18 : vector<16x128xf32>
    %cst_13 = arith.constant 2.000000e-01 : f32
    %20 = vector.broadcast %cst_13 : f32 to vector<16x128xf32>
    %21 = arith.mulf %20, %17 : vector<16x128xf32>
    %22 = arith.select %19, %17, %21 : vector<16x128xi1>, vector<16x128xf32>
    %23 = arith.truncf %22 : vector<16x128xf32> to vector<16x128xbf16>
    %c0_14 = arith.constant 0 : index
    %c0_15 = arith.constant 0 : index
    %24 = vector.load %arg6[%c0_14, %c0_15] : memref<128x128xbf16, #tpu.memory_space<vmem>>, vector<128x128xbf16>
    %cst_16 = arith.constant dense<0.000000e+00> : vector<16x128xf32>
    %25 = tpu.matmul %23, %24, %cst_16 {dimension_numbers = #tpu.dot_dimension_numbers<[1], [0], [0], [1], [0, 0, 1, 1], [], []>} : vector<16x128xbf16>, vector<128x128xbf16>, vector<16x128xf32> -> vector<16x128xf32>
    %c0_17 = arith.constant 0 : index
    %c0_18 = arith.constant 0 : index
    %26 = vector.load %arg7[%c0_17, %c0_18] : memref<1x128xf32, #tpu.memory_space<vmem>>, vector<1x128xf32>
    %27 = vector.broadcast %26 : vector<1x128xf32> to vector<16x128xf32>
    %28 = arith.addf %25, %27 : vector<16x128xf32>
    %29 = arith.truncf %28 : vector<16x128xf32> to vector<16x128xbf16>
    %c0_19 = arith.constant 0 : index
    %c0_20 = arith.constant 0 : index
    %30 = vector.load %arg8[%c0_19, %c0_20] : memref<16x128xbf16, #tpu.memory_space<vmem>>, vector<16x128xbf16>
    tpu.vector_store %arg8[%c0_19, %c0_20], %29 {strides = array<i32>} : memref<16x128xbf16, #tpu.memory_space<vmem>>, vector<16x128xbf16>,
    return
  }
  func.func @transform_0(%arg0: i32) -> (i32, i32) {
    %c0_i32 = arith.constant 0 : i32
    %c0_i32_0 = arith.constant 0 : i32
    return %arg0, %c0_i32 : i32, i32
  }
  func.func @transform_1(%arg0: i32) -> (i32, i32) {
    %c0_i32 = arith.constant 0 : i32
    %c0_i32_0 = arith.constant 0 : i32
    %c0_i32_1 = arith.constant 0 : i32
    return %c0_i32, %c0_i32_0 : i32, i32
  }
  func.func @transform_2(%arg0: i32) -> (i32, i32) {
    %c0_i32 = arith.constant 0 : i32
    %c0_i32_0 = arith.constant 0 : i32
    %c0_i32_1 = arith.constant 0 : i32
    return %c0_i32, %c0_i32_0 : i32, i32
  }
  func.func @transform_3(%arg0: i32) -> (i32, i32) {
    %c0_i32 = arith.constant 0 : i32
    %c0_i32_0 = arith.constant 0 : i32
    %c0_i32_1 = arith.constant 0 : i32
    return %c0_i32, %c0_i32_0 : i32, i32
  }
  func.func @transform_4(%arg0: i32) -> (i32, i32) {
    %c0_i32 = arith.constant 0 : i32
    %c0_i32_0 = arith.constant 0 : i32
    %c0_i32_1 = arith.constant 0 : i32
    return %c0_i32, %c0_i32_0 : i32, i32
  }
  func.func @transform_5(%arg0: i32) -> (i32, i32) {
    %c0_i32 = arith.constant 0 : i32
    %c0_i32_0 = arith.constant 0 : i32
    %c0_i32_1 = arith.constant 0 : i32
    return %c0_i32, %c0_i32_0 : i32, i32
  }
  func.func @transform_6(%arg0: i32) -> (i32, i32) {
    %c0_i32 = arith.constant 0 : i32
    %c0_i32_0 = arith.constant 0 : i32
    %c0_i32_1 = arith.constant 0 : i32
    return %c0_i32, %c0_i32_0 : i32, i32
  }
  func.func @transform_7(%arg0: i32) -> (i32, i32) {
    %c0_i32 = arith.constant 0 : i32
    %c0_i32_0 = arith.constant 0 : i32
    return %arg0, %c0_i32 : i32, i32
  }
}

</mosaic_0001>

<bundles_post_ra>
// kernel: discriminator_forward.1
= control target key start
LH: loop header
LB: loop body
LE: loop exit
PB: predicated region body
PF: predicated region fallthrough
CT: control target
= control target key end

     0   :  { %12 = vsyncpa [#allocation3], 0  ;;  %s918_s0 = inlined_call_operand.vmem [shape: f32[2,160], index: 0, kind: input, shape index: {}]   ;;  %s919_s1 = inlined_call_operand.hbm [shape: bf16[160,128], index: 1, kind: input, shape index: {}]   ;;  %s920_s2 = inlined_call_operand.vmem [shape: f32[1,128], index: 2, kind: input, shape index: {}]   ;;  %s921_s3 = inlined_call_operand.vmem [shape: bf16[128,128], index: 3, kind: input, shape index: {}]   ;;  %s922_s4 = inlined_call_operand.vmem [shape: f32[1,128], index: 4, kind: input, shape index: {}]   ;;  %s923_s5 = inlined_call_operand.hbm [shape: bf16[128,128], index: 5, kind: input, shape index: {}]   ;;  %s924_s6 = inlined_call_operand.vmem [shape: f32[1,128], index: 6, kind: input, shape index: {}]   ;;  %s925_s7 = inlined_call_operand.vmem [shape: bf16[2,128], index: 7, kind: output, shape index: {}]  }
   0x1   :  { %13 = vsyncpa [#allocation5], 0  ;;  %s775_s24 = smov [#allocation2]   ;;  %s727_s28 = scalar_lea.hbm %s919_s1, 1280 }
   0x2   :  { %s21_s25 = sshll.u32 %s775_s24, 4  ;;  %p728_p0 = scmp.ne.s32.totalorder %s919_s1, %s727_s28  ;;  %s22_s25 = int_to_ptr.vmem [resolvable:$true] %s21_s25 }
   0x3   :  { %p731_p1 = scmp.lt.u32.totalorder %s727_s28, %s919_s1 }
   0x5   :  { %p733_p2 = pnand %p731_p1, %p728_p0 }
   0x7   :  { %736 = shalt.err (!%p733_p2)
}
   0x8   :  { %s737_s10 = scalar_lea.vmem %s22_s25, 1280  ;;  %p742_p4 = scmp.lt.s32.totalorder %s22_s25, %s22_s25 }
   0x9   :  { %p738_p3 = scmp.ne.s32.totalorder %s22_s25, %s737_s10  ;;  %p743_p5 = scmp.lt.s32.totalorder %s737_s10, %s737_s10 }
   0xb   :  { %p744_p6 = por %p743_p5, %p742_p4 }
   0xd   :  { %p745_p7 = pnand %p744_p6, %p738_p3 }
   0xf   :  { %748 = shalt.err (!%p745_p7)
}
  0x10   :  { %s776_s11 = smov 64   ;;  %s777_s12 = smov 4  }
  0x11   :  { %27 = dma.hbm_to_vmem [thread:$0]  %s919_s1, 1280, %s22_s25, [#allocation3], %s776_s11, %s776_s11, %s777_s12  }
  0x12   :  { %s778_s15 = smov [#allocation4]   ;;  %s749_s19 = scalar_lea.hbm %s923_s5, 1024 }
  0x13   :  { %s39_s16 = sshll.u32 %s778_s15, 4  ;;  %p750_p8 = scmp.ne.s32.totalorder %s923_s5, %s749_s19  ;;  %s40_s16 = int_to_ptr.vmem [resolvable:$true] %s39_s16 }
  0x14   :  { %p753_p9 = scmp.lt.u32.totalorder %s749_s19, %s923_s5 }
  0x16   :  { %p755_p10 = pnand %p753_p9, %p750_p8 }
  0x18   :  { %758 = shalt.err (!%p755_p10)
}
  0x19   :  { %s759_s24 = scalar_lea.vmem %s40_s16, 1024  ;;  %p764_p12 = scmp.lt.s32.totalorder %s40_s16, %s40_s16 }
  0x1a   :  { %p760_p11 = scmp.ne.s32.totalorder %s40_s16, %s759_s24  ;;  %p765_p13 = scmp.lt.s32.totalorder %s759_s24, %s759_s24 }
  0x1c   :  { %p766_p0 = por %p765_p13, %p764_p12 }
  0x1e   :  { %p767_p1 = pnand %p766_p0, %p760_p11 }
  0x20   :  { %770 = shalt.err (!%p767_p1)
}
  0x21   :  { %45 = dma.hbm_to_vmem [thread:$0]  %s923_s5, 1024, %s40_s16, [#allocation5], %s776_s11, %s776_s11, %s777_s12  }
  0x22   :  { %771 = dma.done.wait [#allocation3], 1280  }
  0x23   :  { %772 = vsyncadd [#allocation3], 4294966016 }
  0x24   :  { %773 = dma.done.wait [#allocation5], 1024  }
  0x25   :  { %774 = vsyncadd [#allocation5], 4294966272  ;;  %v779_v0 = vmov 0   ;;  %v780_v1 = vmov 0.0   ;;  %v693_v2 = vld [vmem:[#allocation2] sm:$0xff]   ;;  %v694_v3 = vld [vmem:[#allocation2 + $0x8] sm:$0xff]   ;;  %v76_v4 = vlaneseq }
  0x26   :  { %204 = vmatprep.subr.bf16.mxu0 %v779_v0  ;;  %644 = vmatprep.subr.bf16.mxu1 %v780_v1  ;;  %v695_v5 = vld [vmem:[#allocation2 + $0x10] sm:$0xff]   ;;  %v696_v7 = vld [vmem:[#allocation2 + $0x18] sm:$0xff]   ;;  %v697_v8 = vld [vmem:[#allocation2 + $0x20] sm:$0xff]   ;;  %vm200_vm0 = vcmask 261120   ;;  %vm781_vm1 = vmmov 0  }
  0x27   :  { %205 = vmatpush1.bf16.msra.mxu0 %v693_v2  ;;  %v848_v6 = vshrl.u32 %v76_v4, 7  ;;  %v723_v9 = vld.sshfl [vmem:[%s918_s0] sm:$0xff pattern:$0x76325410]  ;;  %v708_v14 = vld [vmem:[%s921_s3 + $0x8] sm:$0xff]   ;;  %v699_v19 = vld [vmem:[#allocation2 + $0x30] sm:$0xff]   ;;  %660 = vmatprep.mubr.msk.bf16.mxu1 %vm781_vm1, %v780_v1 }
  0x28   :  { %206 = vmatprep.subr.bf16.mxu0 %v779_v0  ;;  %v724_v10 = vld.sshfl [vmem:[%s918_s0 + $0x8] sm:$0xff pattern:$0x76325410]  ;;  %v725_v11 = vld.sshfl [vmem:[%s918_s0 + $0x10] sm:$0xff pattern:$0x76325410] }
  0x29   :  { %v726_v12 = vld.sshfl [vmem:[%s918_s0 + $0x18] sm:$0xff pattern:$0x76325410]  ;;  %v707_v13 = vld [vmem:[%s921_s3] sm:$0xff]   ;;  %v88_v15 = vcombine.high %v723_v9, %v724_v10  ;;  %v698_v17 = vld [vmem:[#allocation2 + $0x28] sm:$0xff]   ;;  %v87_v26 = vcombine.low %v723_v9, %v724_v10 }
  0x2a   :  { %645 = vmatpush3.bf16.msra.mxu1 %v707_v13  ;;  %v106_v16 = vcombine.high %v725_v11, %v726_v12  ;;  %v709_v20 = vld [vmem:[%s921_s3 + $0x10] sm:$0xff]   ;;  %v710_v21 = vld [vmem:[%s921_s3 + $0x18] sm:$0xff]   ;;  %v711_v23 = vld [vmem:[%s921_s3 + $0x20] sm:$0xff]   ;;  %v105_v27 = vcombine.low %v725_v11, %v726_v12 }
  0x2b   :  { %207 = vmatpush1.bf16.msra.mxu0 %v694_v3  ;;  %646 = vmatprep.subr.bf16.mxu1 %v780_v1  ;;  %v700_v22 = vld [vmem:[#allocation2 + $0x38] sm:$0xff]   ;;  %v701_v24 = vld [vmem:[#allocation2 + $0x40] sm:$0xff]   ;;  %v712_v25 = vld [vmem:[%s921_s3 + $0x28] sm:$0xff]  }
  0x2c   :  { %208 = vmatprep.subr.bf16.mxu0 %v779_v0  ;;  %v112_v18 = vpack.c.bf16 %v106_v16, %v88_v15  ;;  %v702_v28 = vld [vmem:[#allocation2 + $0x48] sm:$0xff]   ;;  %v111_v29 = vpack.c.bf16 %v105_v27, %v87_v26  ;;  %v713_v30 = vld [vmem:[%s921_s3 + $0x30] sm:$0xff]   ;;  %v714_v31 = vld [vmem:[%s921_s3 + $0x38] sm:$0xff]  }
  0x2d   :  { %v591_v32 = vld [vmem:[%s920_s2] ss:$0 sm:$0xff]  ;;  %v715_v43 = vld [vmem:[#allocation4] sm:$0xff]   ;;  %v716_v45 = vld [vmem:[#allocation4 + $0x8] sm:$0xff]  }
  0x2e   :  { %647 = vmatpush3.bf16.msra.mxu1 %v708_v14  ;;  %602 = vmatprep.mubr.msk.bf16.mxu0 %vm200_vm0, %v112_v18  ;;  %v717_v46 = vld [vmem:[#allocation4 + $0x10] sm:$0xff]   ;;  %v718_v47 = vld [vmem:[#allocation4 + $0x18] sm:$0xff]   ;;  %v719_v48 = vld [vmem:[#allocation4 + $0x20] sm:$0xff]  }
  0x2f   :  { %209 = vmatpush1.bf16.msra.mxu0 %v695_v5  ;;  %648 = vmatprep.subr.bf16.mxu1 %v780_v1  ;;  %v720_v49 = vld [vmem:[#allocation4 + $0x28] sm:$0xff]   ;;  %v721_v50 = vld [vmem:[#allocation4 + $0x30] sm:$0xff]   ;;  %v722_v51 = vld [vmem:[#allocation4 + $0x38] sm:$0xff]  }
  0x30   :  { %210 = vmatprep.subr.bf16.mxu0 %v779_v0  ;;  %v603_v52 = vld [vmem:[%s922_s4] ss:$0 sm:$0xff] }
  0x31   :  { %v612_v3 = vld [vmem:[%s924_s6] ss:$0 sm:$0xff] }
  0x32   :  { %649 = vmatpush3.bf16.msra.mxu1 %v709_v20 }
  0x33   :  { %211 = vmatpush1.bf16.msra.mxu0 %v696_v7  ;;  %650 = vmatprep.subr.bf16.mxu1 %v780_v1 }
  0x34   :  { %212 = vmatprep.subr.bf16.mxu0 %v779_v0 }
  0x36   :  { %651 = vmatpush3.bf16.msra.mxu1 %v710_v21 }
  0x37   :  { %213 = vmatpush1.bf16.msra.mxu0 %v697_v8  ;;  %652 = vmatprep.subr.bf16.mxu1 %v780_v1 }
  0x38   :  { %214 = vmatprep.subr.bf16.mxu0 %v779_v0 }
  0x3a   :  { %653 = vmatpush3.bf16.msra.mxu1 %v711_v23 }
  0x3b   :  { %215 = vmatpush1.bf16.msra.mxu0 %v698_v17  ;;  %654 = vmatprep.subr.bf16.mxu1 %v780_v1 }
  0x3c   :  { %216 = vmatprep.subr.bf16.mxu0 %v779_v0 }
  0x3e   :  { %655 = vmatpush3.bf16.msra.mxu1 %v712_v25 }
  0x3f   :  { %217 = vmatpush1.bf16.msra.mxu0 %v699_v19  ;;  %656 = vmatprep.subr.bf16.mxu1 %v780_v1 }
  0x40   :  { %218 = vmatprep.subr.bf16.mxu0 %v779_v0 }
  0x42   :  { %657 = vmatpush3.bf16.msra.mxu1 %v713_v30 }
  0x43   :  { %219 = vmatpush1.bf16.msra.mxu0 %v700_v22  ;;  %658 = vmatprep.subr.bf16.mxu1 %v780_v1 }
  0x44   :  { %220 = vmatprep.subr.bf16.mxu0 %v779_v0 }
  0x46   :  { %659 = vmatpush3.bf16.msra.mxu1 %v714_v31 }
  0x47   :  { %221 = vmatpush1.bf16.msra.mxu0 %v701_v24  ;;  %664 = vmatprep.subr.bf16.mxu1 %v780_v1 }
  0x48   :  { %222 = vmatprep.subr.bf16.mxu0 %v779_v0  ;;  %v782_v0 = vmov 1966171168  }
  0x4b   :  { %223 = vmatpush1.bf16.msra.mxu0 %v702_v28 }
  0x4e   :  { %237 = vmatmul.mubr.bf16.vlgmr.msra.gmra.mrb[0].mxu0 %v111_v29 }
 0x121   :  { %v238_v33 = vpop.f32.mrb[0].mxu0 }
 0x122   :  { %v239_v34 = vadd.f32 %v591_v32, %v238_v33  ;;  %v240_v35 = vpop.f32.mrb[1].mxu0 }
 0x123   :  { %v241_v36 = vpop.f32.mrb[2].mxu0 }
 0x124   :  { %v247_v37 = vmul.f32 0.2, %v239_v34  ;;  %v242_v38 = vadd.f32 %v591_v32, %v241_v36  ;;  %v243_v39 = vpop.f32.mrb[3].mxu0  ;;  %vm245_vm2 = vcmp.gt.f32.partialorder %v239_v34, 0.0 }
 0x126   :  { %vm246_vm3 = vcmp.gt.f32.partialorder %v242_v38, 0.0  ;;  %v248_v40 = vmul.f32 0.2, %v242_v38  ;;  %v249_v41 = vsel %vm245_vm2, %v239_v34, %v247_v37 }
 0x128   :  { %v250_v42 = vsel %vm246_vm3, %v242_v38, %v248_v40 }
 0x129   :  { %v251_v44 = vpack.c.bf16 %v250_v42, %v249_v41 }
 0x12b   :  { %661 = vmatmul.mubr.bf16.vlgmr.msra.gmra.mrb[0].mxu1 %v251_v44 }
 0x12c   :  { %665 = vmatpush3.bf16.msra.mxu1 %v715_v43  ;;  %680 = vmatprep.mubr.msk.bf16.mxu1 %vm781_vm1, %v780_v1 }
 0x12d   :  { %666 = vmatprep.subr.bf16.mxu1 %v780_v1 }
 0x130   :  { %667 = vmatpush3.bf16.msra.mxu1 %v716_v45 }
 0x131   :  { %668 = vmatprep.subr.bf16.mxu1 %v780_v1 }
 0x134   :  { %669 = vmatpush3.bf16.msra.mxu1 %v717_v46 }
 0x135   :  { %670 = vmatprep.subr.bf16.mxu1 %v780_v1 }
 0x138   :  { %671 = vmatpush3.bf16.msra.mxu1 %v718_v47 }
 0x139   :  { %672 = vmatprep.subr.bf16.mxu1 %v780_v1 }
 0x13c   :  { %673 = vmatpush3.bf16.msra.mxu1 %v719_v48 }
 0x13d   :  { %674 = vmatprep.subr.bf16.mxu1 %v780_v1 }
 0x140   :  { %675 = vmatpush3.bf16.msra.mxu1 %v720_v49 }
 0x141   :  { %676 = vmatprep.subr.bf16.mxu1 %v780_v1 }
 0x144   :  { %677 = vmatpush3.bf16.msra.mxu1 %v721_v50 }
 0x145   :  { %678 = vmatprep.subr.bf16.mxu1 %v780_v1  ;;  %v487_v1 = vunpack.c.l.s4 %v782_v0 }
 0x147   :  { %v488_v2 = vunpack.c.0.s8 %v487_v1 }
 0x148   :  { %679 = vmatpush3.bf16.msra.mxu1 %v722_v51 }
 0x149   :  { %v491_v8 = vsub.s32 %v488_v2, %v848_v6 }
 0x1fe   :  { %v357_v53 = vpop.f32.mrb[0].mxu1 }
 0x1ff   :  { %v358_v54 = vadd.f32 %v603_v52, %v357_v53  ;;  %v662_v55 = vpop.f32.mrb[1].mxu1 }
 0x200   :  { %v360_v56 = vpop.f32.mrb[2].mxu1 }
 0x201   :  { %v366_v57 = vmul.f32 0.2, %v358_v54  ;;  %v361_v58 = vadd.f32 %v603_v52, %v360_v56  ;;  %v663_v59 = vpop.f32.mrb[3].mxu1  ;;  %vm364_vm4 = vcmp.gt.f32.partialorder %v358_v54, 0.0 }
 0x203   :  { %vm365_vm5 = vcmp.gt.f32.partialorder %v361_v58, 0.0  ;;  %v367_v60 = vmul.f32 0.2, %v361_v58  ;;  %v368_v61 = vsel %vm364_vm4, %v358_v54, %v366_v57 }
 0x205   :  { %v369_v62 = vsel %vm365_vm5, %v361_v58, %v367_v60 }
 0x206   :  { %v370_v63 = vpack.c.bf16 %v369_v62, %v368_v61 }
 0x208   :  { %681 = vmatmul.mubr.bf16.vlgmr.msra.gmra.mrb[4].mxu1 %v370_v63 }
 0x2db   :  { %v476_v4 = vpop.f32.mrb[4].mxu1 }
 0x2dc   :  { %v682_v5 = vpop.f32.mrb[5].mxu1  ;;  %v477_v9 = vadd.f32 %v612_v3, %v476_v4 }
 0x2dd   :  { %v479_v7 = vpop.f32.mrb[6].mxu1 }
 0x2de   :  { %v480_v10 = vadd.f32 %v612_v3, %v479_v7  ;;  %v683_v11 = vpop.f32.mrb[7].mxu1 }
 0x2e0   :  { %v483_v12 = vpack.c.bf16 %v480_v10, %v477_v9 }
 0x2e2   :  { %v492_v13 = vrot.slane %v483_v12, %v491_v8 }
 0x2e4   :  { %622 = vst.sshfl [vmem:[#allocation6] sm:$0x1 pattern:$0x73625140] %v492_v13 }
 0x2eb   :  { %v567_v14 = vld [vmem:[#allocation6] sm:$0x1] }
 0x2ec   :  { %568 = vst [vmem:[%s925_s7] sm:$0x1] %v567_v14 }
 0x2ed   :  { %585 = vsyncpa [#allocation3], 1 }
 0x2ee   :  { %586 = vsyncpa [#allocation5], 1 }

</bundles_post_ra>
